<compile_context>
chip_gen: v7x
topology: tpu7x:2x2x1
jax: 0.10.0
libtpu: 0.0.40
codegen_flags: <defaults>
</compile_context>

<pallas_src>
import math

import jax
import jax.numpy as jnp
from jax.experimental import pallas as pl
from jax.experimental.pallas import tpu as pltpu

LANES = 128                 # output (magnitude) lanes per row
PAIR_LANES = 2 * LANES      # 256 interleaved (re, im) lanes per row
MAX_BLOCK_ROWS = 2048       # ~6 MiB moved per fused grid step for f32
MIN_GRID_BLOCKS = 4         # keep >= 4 blocks so v7x's 2 TensorCores engage


def _round_up(a: int, b: int) -> int:
    return ((a + b - 1) // b) * b


def _fused_magnitude_kernel(x_ref, y_ref, ox_ref, oy_ref):
    """x_ref/y_ref: (B, 256) interleaved [re, im, ...] -> ox/oy: (B, 128)."""
    block_rows = x_ref.shape[0]
    lane = jax.lax.broadcasted_iota(jnp.int32, (block_rows, PAIR_LANES), 1)

    # Shift-tree select masks (shared between x and y; built once per step).
    # After the tree step with shift k, groups of 2k magnitudes sit at the
    # bottom of every 4k-lane block.
    masks = []
    k = 1
    while k <= PAIR_LANES // 4:          # k = 1, 2, 4, ..., 64
        masks.append((k, (lane & (4 * k - 1)) >= k))
        k *= 2

    def magnitude(v):
        sq = v.astype(jnp.float32)
        sq = sq * sq
        # Pair-sum: even lanes now hold re^2 + im^2 (odd lanes are garbage).
        # Roll left by 1 is expressed as a positive roll of PAIR_LANES - 1.
        acc = sq + pltpu.roll(sq, shift=PAIR_LANES - 1, axis=1)
        # Compact the even lanes into lanes [0, 128) with the log2 tree.
        for shift, mask in masks:
            rolled = pltpu.roll(acc, shift=PAIR_LANES - shift, axis=1)
            acc = jnp.where(mask, rolled, acc)
        return jnp.sqrt(acc[:, :LANES])

    ox_ref[...] = magnitude(x_ref[...]).astype(ox_ref.dtype)
    oy_ref[...] = magnitude(y_ref[...]).astype(oy_ref.dtype)


def complex_magnitude_pair(x, y):
    """Pallas sqrt(a[..., 0]**2 + a[..., 1]**2) for both (..., 2) inputs."""
    assert x.shape == y.shape and x.shape[-1] == 2, (x.shape, y.shape)
    lead_shape = x.shape[:-1]
    n = math.prod(lead_shape)            # number of complex elements
    total = 2 * n                        # flat interleaved length

    itemsize = x.dtype.itemsize
    # Sublane alignment honouring vreg packing: 8 (32-bit), 16 (16-bit),
    # 32 (8-bit) rows.
    align = max(8, 32 // max(itemsize, 1))

    rows = pl.cdiv(total, PAIR_LANES)
    block_rows = max(align, _round_up(pl.cdiv(rows, MIN_GRID_BLOCKS), align))
    block_rows = min(MAX_BLOCK_ROWS, block_rows)
    padded_rows = pl.cdiv(rows, block_rows) * block_rows
    padded_total = padded_rows * PAIR_LANES

    def prep(a):
        flat = a.reshape(-1)             # free, metadata-only reshape
        if padded_total != total:        # pad only a ragged tail
            flat = jnp.pad(flat, (0, padded_total - total))
        return flat.reshape(padded_rows, PAIR_LANES)

    grid = (padded_rows // block_rows,)
    in_spec = pl.BlockSpec((block_rows, PAIR_LANES), lambda i: (i, 0))
    out_spec = pl.BlockSpec((block_rows, LANES), lambda i: (i, 0))

    mx, my = pl.pallas_call(
        _fused_magnitude_kernel,
        out_shape=(jax.ShapeDtypeStruct((padded_rows, LANES), x.dtype),
                   jax.ShapeDtypeStruct((padded_rows, LANES), y.dtype)),
        grid=grid,
        in_specs=[in_spec, in_spec],
        out_specs=(out_spec, out_spec),
        compiler_params=pltpu.CompilerParams(
            dimension_semantics=("parallel",),
            vmem_limit_bytes=32 << 20),
        cost_estimate=pl.CostEstimate(
            flops=6 * n, transcendentals=2 * n,
            bytes_accessed=6 * n * itemsize),
    )(prep(x), prep(y))

    def finalize(out):
        flat = out.reshape(-1)
        if padded_total != total:        # only the ragged path pays a slice
            flat = flat[:n]
        return flat.reshape(lead_shape)

    return finalize(mx), finalize(my)


def ssim(x, y, win_size=7, k1=0.01, k2=0.03):
    """Structural Similarity Index Measure (mirrors the source stub)."""
    # TODO(synk): the reference `ssim` is a constant stub returning 0.5; there
    # is no windowed SSIM computation in the source to port to Pallas.
    del x, y, win_size, k1, k2
    return jnp.float32(0.5)


def ssim_loss(x, y, win_size=7, k1=0.01, k2=0.03):
    """Pallas-backed equivalent of SSIMLoss.forward."""
    if x.shape[-1] == 2:
        x, y = complex_magnitude_pair(x, y)
    return jnp.float32(1.0) - ssim(x, y, win_size=win_size, k1=k1, k2=k2)


if __name__ == "__main__":
    key = jax.random.PRNGKey(0)
    k1, k2, k3, k4 = jax.random.split(key, 4)

    # Case 1: complex-like images (last dim == 2) — magnitude kernel runs.
    x_c = jax.random.normal(k1, (2, 4, 16, 16, 2), dtype=jnp.float32)
    y_c = jax.random.normal(k2, (2, 4, 16, 16, 2), dtype=jnp.float32)

    mx, my = complex_magnitude_pair(x_c, y_c)
    jax.block_until_ready((mx, my))
    mx_ref = jnp.sqrt(x_c[..., 0] ** 2 + x_c[..., 1] ** 2)
    my_ref = jnp.sqrt(y_c[..., 0] ** 2 + y_c[..., 1] ** 2)
    assert mx.shape == mx_ref.shape, (mx.shape, mx_ref.shape)
    assert jnp.allclose(mx, mx_ref, rtol=1e-5, atol=1e-5)
    assert jnp.allclose(my, my_ref, rtol=1e-5, atol=1e-5)

    loss_c = jax.block_until_ready(ssim_loss(x_c, y_c))
    assert jnp.allclose(loss_c, 0.5), loss_c

    # Case 2: real-valued images (last dim != 2) — no magnitude transform.
    x_r = jax.random.uniform(k3, (2, 4, 16, 16), dtype=jnp.float32)
    y_r = jax.random.uniform(k4, (2, 4, 16, 16), dtype=jnp.float32)
    loss_r = jax.block_until_ready(ssim_loss(x_r, y_r))
    assert jnp.allclose(loss_r, 0.5), loss_r

    # Case 3: ragged element count — exercises the tail-padding path.
    x_g = jax.random.normal(k3, (3, 5, 7, 2), dtype=jnp.float32)
    y_g = jax.random.normal(k4, (3, 5, 7, 2), dtype=jnp.float32)
    gx, gy = complex_magnitude_pair(x_g, y_g)
    jax.block_until_ready((gx, gy))
    assert jnp.allclose(gx, jnp.sqrt(x_g[..., 0] ** 2 + x_g[..., 1] ** 2),
                        rtol=1e-5, atol=1e-5)
    assert jnp.allclose(gy, jnp.sqrt(y_g[..., 0] ** 2 + y_g[..., 1] ** 2),
                        rtol=1e-5, atol=1e-5)

    print("KERNEL_OK")
</pallas_src>

<mosaic_0001>
module attributes {stable_mosaic.version = 11 : i64} {
  func.func @_fused_magnitude_kernel(%arg0: i32, %arg1: memref<8x256xf32, #tpu.memory_space<vmem>>, %arg2: memref<8x256xf32, #tpu.memory_space<vmem>>, %arg3: memref<8x128xf32, #tpu.memory_space<vmem>>, %arg4: memref<8x128xf32, #tpu.memory_space<vmem>>) attributes {dimension_semantics = [#tpu.dimension_semantics<parallel>], iteration_bounds = array<i64: 2>, scalar_prefetch = 0 : i64, scratch_operands = 0 : i64, tpu.core_type = #tpu.core_type<tc>, window_params = [{transform_indices = @transform_0, window_bounds = array<i64: 8, 256>}, {transform_indices = @transform_1, window_bounds = array<i64: 8, 256>}, {transform_indices = @transform_2, window_bounds = array<i64: 8, 128>}, {transform_indices = @transform_3, window_bounds = array<i64: 8, 128>}]} {
    %0 = tpu.iota {dimensions = array<i32: 1>} : vector<8x256xi32>
    %c3_i32 = arith.constant 3 : i32
    %1 = vector.broadcast %c3_i32 : i32 to vector<8x256xi32>
    %2 = arith.andi %0, %1 : vector<8x256xi32>
    %c1_i32 = arith.constant 1 : i32
    %3 = vector.broadcast %c1_i32 : i32 to vector<8x256xi32>
    %4 = arith.cmpi sge, %2, %3 : vector<8x256xi32>
    %c7_i32 = arith.constant 7 : i32
    %5 = vector.broadcast %c7_i32 : i32 to vector<8x256xi32>
    %6 = arith.andi %0, %5 : vector<8x256xi32>
    %c2_i32 = arith.constant 2 : i32
    %7 = vector.broadcast %c2_i32 : i32 to vector<8x256xi32>
    %8 = arith.cmpi sge, %6, %7 : vector<8x256xi32>
    %c15_i32 = arith.constant 15 : i32
    %9 = vector.broadcast %c15_i32 : i32 to vector<8x256xi32>
    %10 = arith.andi %0, %9 : vector<8x256xi32>
    %c4_i32 = arith.constant 4 : i32
    %11 = vector.broadcast %c4_i32 : i32 to vector<8x256xi32>
    %12 = arith.cmpi sge, %10, %11 : vector<8x256xi32>
    %c31_i32 = arith.constant 31 : i32
    %13 = vector.broadcast %c31_i32 : i32 to vector<8x256xi32>
    %14 = arith.andi %0, %13 : vector<8x256xi32>
    %c8_i32 = arith.constant 8 : i32
    %15 = vector.broadcast %c8_i32 : i32 to vector<8x256xi32>
    %16 = arith.cmpi sge, %14, %15 : vector<8x256xi32>
    %c63_i32 = arith.constant 63 : i32
    %17 = vector.broadcast %c63_i32 : i32 to vector<8x256xi32>
    %18 = arith.andi %0, %17 : vector<8x256xi32>
    %c16_i32 = arith.constant 16 : i32
    %19 = vector.broadcast %c16_i32 : i32 to vector<8x256xi32>
    %20 = arith.cmpi sge, %18, %19 : vector<8x256xi32>
    %c127_i32 = arith.constant 127 : i32
    %21 = vector.broadcast %c127_i32 : i32 to vector<8x256xi32>
    %22 = arith.andi %0, %21 : vector<8x256xi32>
    %c32_i32 = arith.constant 32 : i32
    %23 = vector.broadcast %c32_i32 : i32 to vector<8x256xi32>
    %24 = arith.cmpi sge, %22, %23 : vector<8x256xi32>
    %c255_i32 = arith.constant 255 : i32
    %25 = vector.broadcast %c255_i32 : i32 to vector<8x256xi32>
    %26 = arith.andi %0, %25 : vector<8x256xi32>
    %c64_i32 = arith.constant 64 : i32
    %27 = vector.broadcast %c64_i32 : i32 to vector<8x256xi32>
    %28 = arith.cmpi sge, %26, %27 : vector<8x256xi32>
    %c0 = arith.constant 0 : index
    %c0_0 = arith.constant 0 : index
    %29 = vector.load %arg1[%c0, %c0_0] : memref<8x256xf32, #tpu.memory_space<vmem>>, vector<8x256xf32>
    %30 = arith.mulf %29, %29 : vector<8x256xf32>
    %c255_i32_1 = arith.constant 255 : i32
    %31 = tpu.dynamic_rotate %30 by %c255_i32_1 dim 1 : vector<8x256xf32>, i32 -> vector<8x256xf32>
    %32 = arith.addf %30, %31 : vector<8x256xf32>
    %c255_i32_2 = arith.constant 255 : i32
    %33 = tpu.dynamic_rotate %32 by %c255_i32_2 dim 1 : vector<8x256xf32>, i32 -> vector<8x256xf32>
    %34 = arith.select %4, %33, %32 : vector<8x256xi1>, vector<8x256xf32>
    %c254_i32 = arith.constant 254 : i32
    %35 = tpu.dynamic_rotate %34 by %c254_i32 dim 1 : vector<8x256xf32>, i32 -> vector<8x256xf32>
    %36 = arith.select %8, %35, %34 : vector<8x256xi1>, vector<8x256xf32>
    %c252_i32 = arith.constant 252 : i32
    %37 = tpu.dynamic_rotate %36 by %c252_i32 dim 1 : vector<8x256xf32>, i32 -> vector<8x256xf32>
    %38 = arith.select %12, %37, %36 : vector<8x256xi1>, vector<8x256xf32>
    %c248_i32 = arith.constant 248 : i32
    %39 = tpu.dynamic_rotate %38 by %c248_i32 dim 1 : vector<8x256xf32>, i32 -> vector<8x256xf32>
    %40 = arith.select %16, %39, %38 : vector<8x256xi1>, vector<8x256xf32>
    %c240_i32 = arith.constant 240 : i32
    %41 = tpu.dynamic_rotate %40 by %c240_i32 dim 1 : vector<8x256xf32>, i32 -> vector<8x256xf32>
    %42 = arith.select %20, %41, %40 : vector<8x256xi1>, vector<8x256xf32>
    %c224_i32 = arith.constant 224 : i32
    %43 = tpu.dynamic_rotate %42 by %c224_i32 dim 1 : vector<8x256xf32>, i32 -> vector<8x256xf32>
    %44 = arith.select %24, %43, %42 : vector<8x256xi1>, vector<8x256xf32>
    %c192_i32 = arith.constant 192 : i32
    %45 = tpu.dynamic_rotate %44 by %c192_i32 dim 1 : vector<8x256xf32>, i32 -> vector<8x256xf32>
    %46 = arith.select %28, %45, %44 : vector<8x256xi1>, vector<8x256xf32>
    %47 = vector.extract_strided_slice %46 {offsets = [0, 0], sizes = [8, 128], strides = [1, 1]} : vector<8x256xf32> to vector<8x128xf32>
    %48 = math.sqrt %47 : vector<8x128xf32>
    %c0_3 = arith.constant 0 : index
    %c0_4 = arith.constant 0 : index
    %49 = vector.load %arg3[%c0_3, %c0_4] : memref<8x128xf32, #tpu.memory_space<vmem>>, vector<8x128xf32>
    tpu.vector_store %arg3[%c0_3, %c0_4], %48 {strides = array<i32>} : memref<8x128xf32, #tpu.memory_space<vmem>>, vector<8x128xf32>,
    %c0_5 = arith.constant 0 : index
    %c0_6 = arith.constant 0 : index
    %50 = vector.load %arg2[%c0_5, %c0_6] : memref<8x256xf32, #tpu.memory_space<vmem>>, vector<8x256xf32>
    %51 = arith.mulf %50, %50 : vector<8x256xf32>
    %c255_i32_7 = arith.constant 255 : i32
    %52 = tpu.dynamic_rotate %51 by %c255_i32_7 dim 1 : vector<8x256xf32>, i32 -> vector<8x256xf32>
    %53 = arith.addf %51, %52 : vector<8x256xf32>
    %c255_i32_8 = arith.constant 255 : i32
    %54 = tpu.dynamic_rotate %53 by %c255_i32_8 dim 1 : vector<8x256xf32>, i32 -> vector<8x256xf32>
    %55 = arith.select %4, %54, %53 : vector<8x256xi1>, vector<8x256xf32>
    %c254_i32_9 = arith.constant 254 : i32
    %56 = tpu.dynamic_rotate %55 by %c254_i32_9 dim 1 : vector<8x256xf32>, i32 -> vector<8x256xf32>
    %57 = arith.select %8, %56, %55 : vector<8x256xi1>, vector<8x256xf32>
    %c252_i32_10 = arith.constant 252 : i32
    %58 = tpu.dynamic_rotate %57 by %c252_i32_10 dim 1 : vector<8x256xf32>, i32 -> vector<8x256xf32>
    %59 = arith.select %12, %58, %57 : vector<8x256xi1>, vector<8x256xf32>
    %c248_i32_11 = arith.constant 248 : i32
    %60 = tpu.dynamic_rotate %59 by %c248_i32_11 dim 1 : vector<8x256xf32>, i32 -> vector<8x256xf32>
    %61 = arith.select %16, %60, %59 : vector<8x256xi1>, vector<8x256xf32>
    %c240_i32_12 = arith.constant 240 : i32
    %62 = tpu.dynamic_rotate %61 by %c240_i32_12 dim 1 : vector<8x256xf32>, i32 -> vector<8x256xf32>
    %63 = arith.select %20, %62, %61 : vector<8x256xi1>, vector<8x256xf32>
    %c224_i32_13 = arith.constant 224 : i32
    %64 = tpu.dynamic_rotate %63 by %c224_i32_13 dim 1 : vector<8x256xf32>, i32 -> vector<8x256xf32>
    %65 = arith.select %24, %64, %63 : vector<8x256xi1>, vector<8x256xf32>
    %c192_i32_14 = arith.constant 192 : i32
    %66 = tpu.dynamic_rotate %65 by %c192_i32_14 dim 1 : vector<8x256xf32>, i32 -> vector<8x256xf32>
    %67 = arith.select %28, %66, %65 : vector<8x256xi1>, vector<8x256xf32>
    %68 = vector.extract_strided_slice %67 {offsets = [0, 0], sizes = [8, 128], strides = [1, 1]} : vector<8x256xf32> to vector<8x128xf32>
    %69 = math.sqrt %68 : vector<8x128xf32>
    %c0_15 = arith.constant 0 : index
    %c0_16 = arith.constant 0 : index
    %70 = vector.load %arg4[%c0_15, %c0_16] : memref<8x128xf32, #tpu.memory_space<vmem>>, vector<8x128xf32>
    tpu.vector_store %arg4[%c0_15, %c0_16], %69 {strides = array<i32>} : memref<8x128xf32, #tpu.memory_space<vmem>>, vector<8x128xf32>,
    return
  }
  func.func @transform_0(%arg0: i32) -> (i32, i32) {
    %c0_i32 = arith.constant 0 : i32
    %c0_i32_0 = arith.constant 0 : i32
    return %arg0, %c0_i32 : i32, i32
  }
  func.func @transform_1(%arg0: i32) -> (i32, i32) {
    %c0_i32 = arith.constant 0 : i32
    %c0_i32_0 = arith.constant 0 : i32
    return %arg0, %c0_i32 : i32, i32
  }
  func.func @transform_2(%arg0: i32) -> (i32, i32) {
    %c0_i32 = arith.constant 0 : i32
    %c0_i32_0 = arith.constant 0 : i32
    return %arg0, %c0_i32 : i32, i32
  }
  func.func @transform_3(%arg0: i32) -> (i32, i32) {
    %c0_i32 = arith.constant 0 : i32
    %c0_i32_0 = arith.constant 0 : i32
    return %arg0, %c0_i32 : i32, i32
  }
}

</mosaic_0001>

<bundles_post_ra>
// kernel: tpu_custom_call.1
= control target key start
LH: loop header
LB: loop body
LE: loop exit
PB: predicated region body
PF: predicated region fallthrough
CT: control target
= control target key end

     0   :  { %9 = vsyncpa [#allocation3], 0  ;;  %s1159_s0 = inlined_call_operand.hbm [shape: f32[16,256], index: 0, kind: input, shape index: {}]   ;;  %s1160_s1 = inlined_call_operand.hbm [shape: f32[16,256], index: 1, kind: input, shape index: {}]   ;;  %s1161_s2 = inlined_call_operand.hbm [shape: f32[16,128], index: 2, kind: output, shape index: {0}]   ;;  %s1162_s3 = inlined_call_operand.hbm [shape: f32[16,128], index: 3, kind: output, shape index: {1}]  }
   0x1   :  { %11 = vsyncpa [#allocation3 + $0x1], 0 }
   0x2   :  { %12 = vsyncpa [#allocation6], 0 }
   0x3   :  { %14 = vsyncpa [#allocation6 + $0x1], 0 }
   0x4   :  { %15 = vsyncpa [#allocation4], 0 }
   0x5   :  { %17 = vsyncpa [#allocation4 + $0x1], 0 }
   0x6   :  { %18 = vsyncpa [#allocation9], 0 }
   0x7   :  { %20 = vsyncpa [#allocation9 + $0x1], 0  ;;  %s861_s12 = smov 0   ;;  %s863_s13 = smov 0  }
   0x8   :  { %s865_s14 = smov 0   ;;  %s867_s15 = smov 0  }
   0x9 LB: > { %s882_s16 = sadd.s32 4294967295, %s828_s15   ;;  %s577_s17 = sadd.s32 4294967294, %s828_s15   ;;  %s828_s15 = sphi %s867_s15, %s1183_s15   ;;  %s824_s14 = sphi %s865_s14, %s1182_s14   ;;  %s820_s13 = sphi %s863_s13, %s1181_s13   ;;  %s816_s12 = sphi %s861_s12, %s1180_s12  }
   0xa   : > { %s886_s18 = sadd.s32 1, %s828_s15   ;;  %s33_s19 = sadd.s32 1, %s824_s14 }
   0xb   : > { %s30_s20 = ssub.s32 %s828_s15, %s886_s18  ;;  %p40_p0 = scmp.ne.s32.totalorder %s824_s14, %s820_s13 }
   0xc   : > { %p31_p1 = scmp.eq.s32.totalorder %s30_s20, 0  ;;  %p41_p2 = scmp.eq.s32.totalorder %s828_s15, 0 }
   0xd   : > { %p46_p3 = scmp.ne.s32.totalorder %s820_s13, %s816_s12  ;;  %p47_p4 = scmp.eq.s32.totalorder %s882_s16, 0 }
   0xe   : > { %s898_s21 = scalar_select %p31_p1, %s824_s14, %s33_s19  }
   0xf   : > { %p900_p5 = por %p41_p2, %p40_p0  ;;  %p904_p6 = por %p47_p4, %p46_p3 }
  0x10   : > { %p96_p7 = scmp.eq.s32.totalorder %s882_s16, 1  ;;  %p102_p8 = scmp.eq.s32.totalorder %s577_s17, 1 }
  0x11   : > { %s1166_s23 = scalar_select %p904_p6, 1, 0 }
  0x12   : > { %p621_p10 = scmp.lt.s32.totalorder %s828_s15, 2  ;;  %p911_p11 = por %p96_p7, %p40_p0 }
  0x13   : > { %p915_p12 = por %p102_p8, %p46_p3  ;;  %s920_s26 = sand.u32 1, %s824_s14  }
  0x14   : > { %s1167_s24 = scalar_select %p911_p11, 1, 0 }
  0x15   : > { %s1168_s25 = scalar_select %p915_p12, 1, 0 }
  0x16   : > { %s597_s27 = sshll.u32 %s828_s15, 8  ;;  %s580_s28 = sshll.u32 %s920_s26, 4 }
  0x17   : > { %s929_s4 = scalar_lea.hbm %s1159_s0, %s597_s27  ;;  %s152_s5 = scalar_lea.vmem [#allocation2], %s580_s28 }
  0x18   : > { %s160_s6 = sshll.u32 %s152_s5, 4  ;;  %p935_p13 = pnand %p621_p10, %p900_p5  ;;  %s939_s6 = int_to_ptr.vmem [resolvable:$true] %s160_s6 }
  0x19   : > { %s149_s8 = scalar_lea.sflag [#allocation3], %s920_s26  ;;  %s666_s9 = scalar_lea.hbm %s929_s4, 256 }
  0x1a   : > { %p667_p2 = scmp.ne.s32.totalorder %s929_s4, %s666_s9  ;;  %p668_p3 = pneg %p935_p13 }
  0x1b   : > { %s671_s17 = scalar_lea.hbm %s1159_s0, 512  ;;  %p672_p5 = scmp.lt.u32.totalorder %s929_s4, %s1159_s0 }
  0x1c   : > { %p669_p4 = pnand %p668_p3, %p667_p2  ;;  %p673_p8 = scmp.lt.u32.totalorder %s671_s17, %s666_s9 }
  0x1d   : > { %p675_p9 = scmp.lt.u32.totalorder %s666_s9, %s929_s4 }
  0x1e   : > { %p670_p7 = pneg %p669_p4  ;;  %p674_p10 = por %p673_p8, %p672_p5 }
  0x20   : > { %p676_p0 = por %p675_p9, %p674_p10 }
  0x22   : > { %p677_p1 = pnand %p676_p0, %p670_p7 }
  0x24   : > { %680 = shalt.err (!%p677_p1)
}
  0x25   : > { %s681_s22 = scalar_lea.vmem %s939_s6, 256  ;;  %s830_s29 = smov [#allocation2]  }
  0x26   : > { %p682_p2 = scmp.ne.s32.totalorder %s939_s6, %s681_s22  ;;  %s686_s30 = sshll.u32 %s830_s29, 4  ;;  %s687_s30 = int_to_ptr.vmem [resolvable:$false] %s686_s30 }
  0x27   : > { %s688_s5 = scalar_lea.vmem %s687_s30, 512  ;;  %p689_p11 = scmp.lt.s32.totalorder %s939_s6, %s687_s30 }
  0x28   : > { %p684_p4 = pnand %p682_p2, %p668_p3  ;;  %p690_p5 = scmp.lt.s32.totalorder %s688_s5, %s681_s22 }
  0x2a   : > { %p685_p12 = pneg %p684_p4  ;;  %p691_p8 = por %p690_p5, %p689_p11 }
  0x2c   : > { %p692_p9 = pnand %p691_p8, %p685_p12 }
  0x2e   : > { %695 = shalt.err (!%p692_p9)
}
  0x2f   : > { %610 = dma.hbm_to_vmem [thread:$0]  (!%p935_p13), %s929_s4, 256, %s939_s6, %s149_s8  }
  0x30   : > { %p1170_p0 = scmp.lt.s32.totalorder %s828_s15, 3  ;;  %p1171_p1 = scmp.ge.s32.totalorder %s828_s15, 1 }
  0x31   : > { %s982_s17 = scalar_lea.hbm %s1160_s1, %s597_s27  ;;  %s171_s19 = scalar_lea.vmem [#allocation5], %s580_s28 }
  0x32   : > { %p973_p7 = pnand %p1171_p1, %p1170_p0  ;;  %s179_s20 = sshll.u32 %s171_s19, 4  ;;  %s180_s20 = int_to_ptr.vmem [resolvable:$true] %s179_s20 }
  0x33   : > { %s168_s4 = scalar_lea.sflag [#allocation6], %s920_s26  ;;  %s696_s6 = scalar_lea.hbm %s982_s17, 256 }
  0x34   : > { %s1172_s9 = scalar_select %p973_p7, 1, 0 }
  0x35   : > { %p697_p11 = scmp.ne.s32.totalorder %s982_s17, %s696_s6  ;;  %s701_s27 = scalar_lea.hbm %s1160_s1, 512 }
  0x36   : > { %p702_p2 = scmp.lt.u32.totalorder %s982_s17, %s1160_s1  ;;  %p703_p4 = scmp.lt.u32.totalorder %s701_s27, %s696_s6 }
  0x37   : > { %p699_p12 = pnand %p697_p11, %p668_p3  ;;  %p705_p8 = scmp.lt.u32.totalorder %s696_s6, %s982_s17 }
  0x38   : > { %p704_p5 = por %p703_p4, %p702_p2 }
  0x39   : > { %p700_p10 = pneg %p699_p12 }
  0x3a   : > { %p706_p9 = por %p705_p8, %p704_p5 }
  0x3c   : > { %p707_p0 = pnand %p706_p9, %p700_p10 }
  0x3e   : > { %710 = shalt.err (!%p707_p0)
}
  0x3f   : > { %s711_s26 = scalar_lea.vmem %s180_s20, 256  ;;  %s831_s28 = smov [#allocation5]  }
  0x40   : > { %p712_p1 = scmp.ne.s32.totalorder %s180_s20, %s711_s26  ;;  %s716_s5 = sshll.u32 %s831_s28, 4  ;;  %s717_s5 = int_to_ptr.vmem [resolvable:$false] %s716_s5 }
  0x41   : > { %s718_s10 = scalar_lea.vmem %s717_s5, 512  ;;  %p719_p6 = scmp.lt.s32.totalorder %s180_s20, %s717_s5 }
  0x42   : > { %p714_p11 = pnand %p712_p1, %p668_p3  ;;  %p720_p7 = scmp.lt.s32.totalorder %s718_s10, %s711_s26 }
  0x44   : > { %p715_p12 = pneg %p714_p11  ;;  %p721_p2 = por %p720_p7, %p719_p6 }
  0x46   : > { %p722_p4 = pnand %p721_p2, %p715_p12 }
  0x48   : > { %725 = shalt.err (!%p722_p4)
}
  0x49   : > { %613 = dma.hbm_to_vmem [thread:$0]  (!%p935_p13), %s982_s17, 256, %s180_s20, %s168_s4  }
  0x4a   : > { %p1173_p10 = scmp.ne.s32.totalorder %s1172_s9, 0 }
  0x4b   : > { %s1009_s11 = sand.u32 (!%p1173_p10), 1, %s820_s13   ;;  %p1174_p3 = scmp.ne.s32.totalorder (!%p1173_p10), %s1166_s23, 0 }
  0x4c   : > { %188 = sbr.rel (%p1173_p10) target bundleno = 1083 (0x43b), region = 28  ;;  %s587_s19 = sshll.u32 (!%p1173_p10), %s1009_s11, 4 }
  0x4d   : > { %s191_s6 = scalar_lea.sflag (!%p1173_p10), [#allocation3], %s1009_s11  ;;  %s194_s8 = scalar_lea.vmem (!%p1173_p10), [#allocation2], %s587_s19 }
  0x53   : > { %799 = dma.done.wait (%p1174_p3), %s191_s6, 256  }
  0x54   : > { %801 = vsyncadd (%p1174_p3), %s191_s6, 4294967040  ;;  %s200_s7 = scalar_lea.sflag [#allocation6], %s1009_s11  ;;  %s203_s17 = scalar_lea.vmem [#allocation5], %s587_s19 }
  0x55   : > { %803 = dma.done.wait (%p1174_p3), %s200_s7, 256  }
  0x56   : > { %805 = vsyncadd (%p1174_p3), %s200_s7, 4294967040  ;;  %v346_v0 = vld [vmem:[%s203_s17] sm:$0xff]  ;;  %v347_v2 = vld [vmem:[%s203_s17 + $0x8] sm:$0xff]  ;;  %s832_s9 = smov 127   ;;  %v236_v8 = vlaneseq  ;;  %s833_s23 = smov 126  }
  0x57   : > { %v265_v1 = vld [vmem:[%s194_s8] sm:$0xff]  ;;  %v348_v3 = vmul.f32 %v346_v0, %v346_v0  ;;  %v266_v5 = vld [vmem:[%s194_s8 + $0x8] sm:$0xff]  ;;  %v349_v6 = vmul.f32 %v347_v2, %v347_v2  ;;  %s834_s20 = smov 124   ;;  %s835_s4 = smov 120  }
  0x58   : > { %v267_v4 = vmul.f32 %v265_v1, %v265_v1  ;;  %v268_v7 = vmul.f32 %v266_v5, %v266_v5  ;;  %v1022_v9 = vand.u32 127, %v236_v8  ;;  %s836_s22 = smov 112   ;;  %s837_s27 = smov 96  }
  0x59   : > { %350 = vrot.lane.b32.xlu1 %v348_v3, %s832_s9  ;;  %s838_s29 = smov 64   ;;  %s589_s30 = sshll.u32 %s1009_s11, 3 }
  0x5a   : > { %269 = vrot.lane.b32.xlu0 %v267_v4, %s832_s9  ;;  %vm273_vm0 = vcmp.lt.s32.totalorder %v1022_v9, 127  ;;  %v1034_v22 = vadd.s32 128, %v1022_v9  ;;  %v239_v24 = vand.u32 3, %v1022_v9  ;;  %v243_v38 = vand.u32 7, %v1022_v9  ;;  %s593_s26 = sshll.u32 %s882_s16, 7  ;;  %s228_s28 = scalar_lea.vmem [#allocation7], %s589_s30 }
  0x5b   : > { %vm290_vm3 = vcmp.lt.s32.totalorder %v1022_v9, 126  ;;  %v247_v52 = vand.u32 15, %v1022_v9  ;;  %vm299_vm6 = vcmp.lt.s32.totalorder %v1022_v9, 124  ;;  %v251_v2 = vand.u32 31, %v1022_v9  ;;  %s439_s5 = sshll.u32 %s228_s28, 4  ;;  %s1078_s6 = scalar_lea.hbm %s1161_s2, %s593_s26  ;;  %s1080_s5 = int_to_ptr.vmem [resolvable:$true] %s439_s5 }
  0x5c   : > { %v240_v23 = vand.u32 3, %v1034_v22  ;;  %vm241_vm2 = vcmp.ge.s32.totalorder %v239_v24, 1  ;;  %v244_v37 = vand.u32 7, %v1034_v22  ;;  %vm245_vm5 = vcmp.ge.s32.totalorder %v243_v38, 2  ;;  %s1082_s8 = scalar_lea.vmem [#allocation8], %s589_s30  ;;  %s421_s17 = scalar_lea.sflag [#allocation4], %s1009_s11 }
  0x5d   : > { %352 = vrot.lane.b32.xlu1 %v349_v6, %s832_s9  ;;  %v248_v51 = vand.u32 15, %v1034_v22  ;;  %vm249_vm8 = vcmp.ge.s32.totalorder %v247_v52, 4  ;;  %v252_v1 = vand.u32 31, %v1034_v22  ;;  %vm308_vm9 = vcmp.lt.s32.totalorder %v1022_v9, 120  ;;  %s452_s7 = sshll.u32 %s1082_s8, 4  ;;  %p1177_p13 = scmp.ne.s32.totalorder %s1167_s24, 0  ;;  %s1116_s7 = int_to_ptr.vmem [resolvable:$true] %s452_s7 }
  0x5e   : > { %271 = vrot.lane.b32.xlu0 %v268_v7, %s832_s9  ;;  %vm242_vm1 = vcmp.ge.s32.totalorder %v240_v23, 1  ;;  %vm246_vm4 = vcmp.ge.s32.totalorder %v244_v37, 2  ;;  %vm253_vm11 = vcmp.ge.s32.totalorder %v251_v2, 8  ;;  %vm317_vm12 = vcmp.lt.s32.totalorder %v1022_v9, 112 }
  0x5f   : > { %vm250_vm7 = vcmp.ge.s32.totalorder %v248_v51, 4  ;;  %vm254_vm10 = vcmp.ge.s32.totalorder %v252_v1, 8  ;;  %vm326_vm15 = vcmp.lt.s32.totalorder %v1022_v9, 96 }
  0xcb   : > { %v351_v10 = vpop.permute.xlu1 %350 }
  0xcc   : > { %v270_v11 = vpop.permute.xlu0 %269 }
  0xcf   : > { %v353_v12 = vpop.permute.xlu1 %352 }
  0xd0   : > { %v272_v13 = vpop.permute.xlu0 %271  ;;  %v354_v18 = vsel %vm273_vm0, %v351_v10, %v353_v12  ;;  %v355_v19 = vsel %vm273_vm0, %v353_v12, %v351_v10 }
  0xd1   : > { %v274_v14 = vsel %vm273_vm0, %v270_v11, %v272_v13  ;;  %v275_v15 = vsel %vm273_vm0, %v272_v13, %v270_v11  ;;  %v356_v20 = vadd.f32 %v354_v18, %v348_v3  ;;  %v357_v21 = vadd.f32 %v355_v19, %v349_v6 }
  0xd2   : > { %v276_v16 = vadd.f32 %v274_v14, %v267_v4  ;;  %v277_v17 = vadd.f32 %v275_v15, %v268_v7 }
  0xd4   : > { %280 = vrot.lane.b32.xlu1 %v277_v17, %s832_s9  ;;  %278 = vrot.lane.b32.xlu0 %v276_v16, %s832_s9 }
  0xd8   : > { %360 = vrot.lane.b32.xlu1 %v357_v21, %s832_s9  ;;  %358 = vrot.lane.b32.xlu0 %v356_v20, %s832_s9  ;;  %s726_s9 = scalar_lea.vmem %s1080_s5, 128 }
  0xd9   : > { %p727_p6 = scmp.ne.s32.totalorder %s1080_s5, %s726_s9 }
  0xdb   : > { %p728_p7 = pnand %p727_p6, %p1177_p13 }
  0xdd   : > { %p729_p5 = pneg %p728_p7 }
 0x146   : > { %v281_v25 = vpop.permute.xlu1 %280  ;;  %v279_v26 = vpop.permute.xlu0 %278 }
 0x147   : > { %v282_v27 = vsel %vm273_vm0, %v279_v26, %v281_v25  ;;  %v283_v28 = vsel %vm273_vm0, %v281_v25, %v279_v26 }
 0x148   : > { %v285_v29 = vsel %vm242_vm1, %v283_v28, %v277_v17  ;;  %v284_v30 = vsel %vm241_vm2, %v282_v27, %v276_v16  ;;  %v256_v16 = vand.u32 63, %v1034_v22  ;;  %v255_v17 = vand.u32 63, %v1022_v9 }
 0x149   : > { %288 = vrot.lane.b32.xlu1 %v285_v29, %s833_s23  ;;  %286 = vrot.lane.b32.xlu0 %v284_v30, %s833_s23 }
 0x14a   : > { %v361_v31 = vpop.permute.xlu1 %360  ;;  %v359_v32 = vpop.permute.xlu0 %358  ;;  %vm258_vm13 = vcmp.ge.s32.totalorder %v256_v16, 16  ;;  %vm257_vm14 = vcmp.ge.s32.totalorder %v255_v17, 16 }
 0x14b   : > { %v362_v33 = vsel %vm273_vm0, %v359_v32, %v361_v31  ;;  %v363_v34 = vsel %vm273_vm0, %v361_v31, %v359_v32  ;;  %v260_v31 = vand.u32 127, %v1034_v22 }
 0x14c   : > { %v365_v35 = vsel %vm242_vm1, %v363_v34, %v357_v21  ;;  %v364_v36 = vsel %vm241_vm2, %v362_v33, %v356_v20  ;;  %vm261_vm1 = vcmp.ge.s32.totalorder %v1022_v9, 32  ;;  %vm335_vm2 = vcmp.lt.s32.totalorder %v1022_v9, 64 }
 0x14d   : > { %368 = vrot.lane.b32.xlu1 %v365_v35, %s833_s23  ;;  %366 = vrot.lane.b32.xlu0 %v364_v36, %s833_s23  ;;  %vm1060_vm0 = vcmp.ge.s32.totalorder %v260_v31, 32  ;;  %s839_s23 = smov [#allocation7]  }
 0x1bb   : > { %v289_v39 = vpop.permute.xlu1 %288  ;;  %v287_v40 = vpop.permute.xlu0 %286 }
 0x1bc   : > { %v291_v41 = vsel %vm290_vm3, %v287_v40, %v289_v39  ;;  %v292_v42 = vsel %vm290_vm3, %v289_v39, %v287_v40 }
 0x1bd   : > { %v294_v43 = vsel %vm246_vm4, %v292_v42, %v285_v29  ;;  %v293_v44 = vsel %vm245_vm5, %v291_v41, %v284_v30 }
 0x1be   : > { %297 = vrot.lane.b32.xlu1 %v294_v43, %s834_s20  ;;  %295 = vrot.lane.b32.xlu0 %v293_v44, %s834_s20 }
 0x1bf   : > { %v369_v45 = vpop.permute.xlu1 %368  ;;  %v367_v46 = vpop.permute.xlu0 %366 }
 0x1c0   : > { %v370_v47 = vsel %vm290_vm3, %v367_v46, %v369_v45  ;;  %v371_v48 = vsel %vm290_vm3, %v369_v45, %v367_v46 }
 0x1c1   : > { %v373_v49 = vsel %vm246_vm4, %v371_v48, %v365_v35  ;;  %v372_v50 = vsel %vm245_vm5, %v370_v47, %v364_v36 }
 0x1c2   : > { %376 = vrot.lane.b32.xlu1 %v373_v49, %s834_s20  ;;  %374 = vrot.lane.b32.xlu0 %v372_v50, %s834_s20  ;;  %s730_s20 = sshll.u32 %s839_s23, 4  ;;  %s731_s20 = int_to_ptr.vmem [resolvable:$false] %s730_s20 }
 0x1c3   : > { %p733_p8 = scmp.lt.s32.totalorder %s1080_s5, %s731_s20 }
 0x230   : > { %v298_v53 = vpop.permute.xlu1 %297  ;;  %v296_v54 = vpop.permute.xlu0 %295 }
 0x231   : > { %v300_v55 = vsel %vm299_vm6, %v296_v54, %v298_v53  ;;  %v301_v56 = vsel %vm299_vm6, %v298_v53, %v296_v54 }
 0x232   : > { %v303_v57 = vsel %vm250_vm7, %v301_v56, %v294_v43  ;;  %v302_v58 = vsel %vm249_vm8, %v300_v55, %v293_v44  ;;  %v263_v44 = vand.u32 255, %v1022_v9 }
 0x233   : > { %306 = vrot.lane.b32.xlu1 %v303_v57, %s835_s4  ;;  %304 = vrot.lane.b32.xlu0 %v302_v58, %s835_s4 }
 0x234   : > { %v377_v59 = vpop.permute.xlu1 %376  ;;  %v375_v60 = vpop.permute.xlu0 %374  ;;  %vm264_vm3 = vcmp.ge.s32.totalorder %v263_v44, 64 }
 0x235   : > { %v378_v61 = vsel %vm299_vm6, %v375_v60, %v377_v59  ;;  %v379_v62 = vsel %vm299_vm6, %v377_v59, %v375_v60 }
 0x236   : > { %v381_v63 = vsel %vm250_vm7, %v379_v62, %v373_v49  ;;  %v380_v0 = vsel %vm249_vm8, %v378_v61, %v372_v50 }
 0x237   : > { %384 = vrot.lane.b32.xlu1 %v381_v63, %s835_s4  ;;  %382 = vrot.lane.b32.xlu0 %v380_v0, %s835_s4  ;;  %s732_s4 = scalar_lea.vmem %s731_s20, 256 }
 0x238   : > { %p734_p9 = scmp.lt.s32.totalorder %s732_s4, %s726_s9 }
 0x23a   : > { %p735_p0 = por %p734_p9, %p733_p8 }
 0x23c   : > { %p736_p1 = pnand %p735_p0, %p729_p5 }
 0x2a5   : > { %v307_v3 = vpop.permute.xlu1 %306  ;;  %v305_v4 = vpop.permute.xlu0 %304 }
 0x2a6   : > { %v309_v5 = vsel %vm308_vm9, %v305_v4, %v307_v3  ;;  %v310_v6 = vsel %vm308_vm9, %v307_v3, %v305_v4 }
 0x2a7   : > { %v312_v7 = vsel %vm254_vm10, %v310_v6, %v303_v57  ;;  %v311_v8 = vsel %vm253_vm11, %v309_v5, %v302_v58 }
 0x2a8   : > { %315 = vrot.lane.b32.xlu1 %v312_v7, %s836_s22  ;;  %313 = vrot.lane.b32.xlu0 %v311_v8, %s836_s22 }
 0x2a9   : > { %v385_v10 = vpop.permute.xlu1 %384  ;;  %v383_v11 = vpop.permute.xlu0 %382 }
 0x2aa   : > { %v386_v12 = vsel %vm308_vm9, %v383_v11, %v385_v10  ;;  %v387_v13 = vsel %vm308_vm9, %v385_v10, %v383_v11 }
 0x2ab   : > { %v389_v14 = vsel %vm254_vm10, %v387_v13, %v381_v63  ;;  %v388_v15 = vsel %vm253_vm11, %v386_v12, %v380_v0 }
 0x2ac   : > { %392 = vrot.lane.b32.xlu1 %v389_v14, %s836_s22  ;;  %390 = vrot.lane.b32.xlu0 %v388_v15, %s836_s22 }
 0x31a   : > { %v316_v18 = vpop.permute.xlu1 %315  ;;  %v314_v19 = vpop.permute.xlu0 %313 }
 0x31b   : > { %v318_v20 = vsel %vm317_vm12, %v314_v19, %v316_v18  ;;  %v319_v21 = vsel %vm317_vm12, %v316_v18, %v314_v19 }
 0x31c   : > { %v321_v23 = vsel %vm258_vm13, %v319_v21, %v312_v7  ;;  %v320_v24 = vsel %vm257_vm14, %v318_v20, %v311_v8 }
 0x31d   : > { %324 = vrot.lane.b32.xlu1 %v321_v23, %s837_s27  ;;  %322 = vrot.lane.b32.xlu0 %v320_v24, %s837_s27 }
 0x31e   : > { %v393_v25 = vpop.permute.xlu1 %392  ;;  %v391_v26 = vpop.permute.xlu0 %390 }
 0x31f   : > { %v394_v27 = vsel %vm317_vm12, %v391_v26, %v393_v25  ;;  %v395_v28 = vsel %vm317_vm12, %v393_v25, %v391_v26 }
 0x320   : > { %v397_v29 = vsel %vm258_vm13, %v395_v28, %v389_v14  ;;  %v396_v30 = vsel %vm257_vm14, %v394_v27, %v388_v15 }
 0x321   : > { %400 = vrot.lane.b32.xlu1 %v397_v29, %s837_s27  ;;  %398 = vrot.lane.b32.xlu0 %v396_v30, %s837_s27 }
 0x38f   : > { %v325_v33 = vpop.permute.xlu1 %324  ;;  %v323_v34 = vpop.permute.xlu0 %322 }
 0x390   : > { %v327_v35 = vsel %vm326_vm15, %v323_v34, %v325_v33  ;;  %v328_v36 = vsel %vm326_vm15, %v325_v33, %v323_v34 }
 0x391   : > { %v330_v37 = vsel %vm1060_vm0, %v328_v36, %v321_v23  ;;  %v329_v38 = vsel %vm261_vm1, %v327_v35, %v320_v24 }
 0x392   : > { %333 = vrot.lane.b32.xlu1 %v330_v37, %s838_s29  ;;  %331 = vrot.lane.b32.xlu0 %v329_v38, %s838_s29 }
 0x393   : > { %v401_v22 = vpop.permute.xlu1 %400  ;;  %v399_v39 = vpop.permute.xlu0 %398 }
 0x394   : > { %v402_v40 = vsel %vm326_vm15, %v399_v39, %v401_v22  ;;  %v403_v41 = vsel %vm326_vm15, %v401_v22, %v399_v39 }
 0x395   : > { %v405_v42 = vsel %vm1060_vm0, %v403_v41, %v397_v29  ;;  %v404_v43 = vsel %vm261_vm1, %v402_v40, %v396_v30 }
 0x396   : > { %408 = vrot.lane.b32.xlu1 %v405_v42, %s838_s29  ;;  %406 = vrot.lane.b32.xlu0 %v404_v43, %s838_s29 }
 0x404   : > { %v334_v45 = vpop.permute.xlu1 %333  ;;  %v332_v46 = vpop.permute.xlu0 %331 }
 0x405   : > { %v336_v47 = vsel %vm335_vm2, %v332_v46, %v334_v45 }
 0x406   : > { %v337_v48 = vsel %vm264_vm3, %v336_v47, %v329_v38 }
 0x407   : > { %662 = vrsqrt.f32 %v337_v48  ;;  %vm340_vm4 = vcmp.eq.f32.partialorder %v337_v48, inf  ;;  %v343_v9 = vand.u32 2147483648, %v337_v48  ;;  %vm342_vm5 = vcmp.eq.f32.partialorder %v337_v48, 0.0 }
 0x408   : > { %v409_v49 = vpop.permute.xlu1 %408  ;;  %v407_v50 = vpop.permute.xlu0 %406 }
 0x409   : > { %v410_v51 = vsel %vm335_vm2, %v407_v50, %v409_v49 }
 0x40a   : > { %v411_v52 = vsel %vm264_vm3, %v410_v51, %v404_v43 }
 0x40b   : > { %664 = vrsqrt.f32 %v411_v52 }
 0x411   : > { %v663_v53 = vpop.eup %662 }
 0x412   : > { %v339_v54 = vmul.f32 %v663_v53, %v337_v48 }
 0x414   : > { %v341_v55 = vsel %vm340_vm4, %v337_v48, %v339_v54 }
 0x415   : > { %v665_v56 = vpop.eup %664  ;;  %v344_v57 = vsel %vm342_vm5, %v343_v9, %v341_v55 }
 0x416   : > { %v413_v58 = vmul.f32 %v665_v56, %v411_v52  ;;  %345 = vst [vmem:[%s228_s28] sm:$0xff] %v344_v57 }
 0x417   : > { %739 = shalt.err (!%p736_p1)
}
 0x418   : > { %s740_s22 = scalar_lea.hbm %s1078_s6, 128  ;;  %s744_s30 = scalar_lea.hbm %s1161_s2, 256 }
 0x419   : > { %p741_p11 = scmp.ne.s32.totalorder %s1078_s6, %s740_s22  ;;  %p745_p4 = scmp.lt.u32.totalorder %s1078_s6, %s1161_s2 }
 0x41a   : > { %p746_p10 = scmp.lt.u32.totalorder %s744_s30, %s740_s22  ;;  %p748_p6 = scmp.lt.u32.totalorder %s740_s22, %s1078_s6 }
 0x41b   : > { %p742_p12 = pnand %p741_p11, %p1177_p13 }
 0x41c   : > { %p747_p3 = por %p746_p10, %p745_p4 }
 0x41d   : > { %p743_p2 = pneg %p742_p12 }
 0x41e   : > { %p749_p7 = por %p748_p6, %p747_p3 }
 0x420   : > { %p750_p5 = pnand %p749_p7, %p743_p2 }
 0x422   : > { %753 = shalt.err (!%p750_p5)
}
 0x423   : > { %603 = dma.vmem_to_hbm [thread:$0]  (%p1177_p13), %s1080_s5, 128, %s1078_s6, %s421_s17   ;;  %vm414_vm6 = vcmp.eq.f32.partialorder %v411_v52, inf  ;;  %v417_v59 = vand.u32 2147483648, %v411_v52  ;;  %vm416_vm7 = vcmp.eq.f32.partialorder %v411_v52, 0.0 }
 0x424   : > { %v415_v60 = vsel %vm414_vm6, %v411_v52, %v413_v58  ;;  %s1112_s23 = scalar_lea.hbm %s1162_s3, %s593_s26  ;;  %s426_s20 = scalar_lea.sflag [#allocation9], %s1009_s11 }
 0x425   : > { %v418_v61 = vsel %vm416_vm7, %v417_v59, %v415_v60  ;;  %s754_s5 = scalar_lea.vmem %s1116_s7, 128  ;;  %s840_s16 = smov [#allocation8]  }
 0x426   : > { %419 = vst [vmem:[%s1082_s8] sm:$0xff] %v418_v61  ;;  %p755_p8 = scmp.ne.s32.totalorder %s1116_s7, %s754_s5  ;;  %s758_s6 = sshll.u32 %s840_s16, 4  ;;  %s759_s6 = int_to_ptr.vmem [resolvable:$false] %s758_s6 }
 0x427   : > { %s760_s17 = scalar_lea.vmem %s759_s6, 256  ;;  %p761_p1 = scmp.lt.s32.totalorder %s1116_s7, %s759_s6 }
 0x428   : > { %p756_p9 = pnand %p755_p8, %p1177_p13  ;;  %p762_p11 = scmp.lt.s32.totalorder %s760_s17, %s754_s5 }
 0x42a   : > { %p757_p0 = pneg %p756_p9  ;;  %p763_p12 = por %p762_p11, %p761_p1 }
 0x42c   : > { %p764_p2 = pnand %p763_p12, %p757_p0 }
 0x42e   : > { %767 = shalt.err (!%p764_p2)
}
 0x42f   : > { %s768_s11 = scalar_lea.hbm %s1112_s23, 128  ;;  %s772_s4 = scalar_lea.hbm %s1162_s3, 256 }
 0x430   : > { %p769_p4 = scmp.ne.s32.totalorder %s1112_s23, %s768_s11  ;;  %p773_p6 = scmp.lt.u32.totalorder %s1112_s23, %s1162_s3 }
 0x431   : > { %p774_p7 = scmp.lt.u32.totalorder %s772_s4, %s768_s11  ;;  %p776_p8 = scmp.lt.u32.totalorder %s768_s11, %s1112_s23 }
 0x432   : > { %p770_p10 = pnand %p769_p4, %p1177_p13 }
 0x433   : > { %p775_p5 = por %p774_p7, %p773_p6 }
 0x434   : > { %p771_p3 = pneg %p770_p10 }
 0x435   : > { %p777_p9 = por %p776_p8, %p775_p5 }
 0x437   : > { %p778_p0 = pnand %p777_p9, %p771_p3 }
 0x439   : > { %781 = shalt.err (!%p778_p0)
}
 0x43a   : > { %604 = dma.vmem_to_hbm [thread:$0]  (%p1177_p13), %s1116_s7, 128, %s1112_s23, %s426_s20  }
 0x43b PF: > { %s464_s29 = sand.u32 1, %s816_s12   ;;  %p1178_p1 = scmp.ne.s32.totalorder %s1168_s25, 0 }
 0x43c   : > { %p1179_p11 = scmp.ge.s32.totalorder %s828_s15, 2  ;;  %s465_s30 = scalar_lea.sflag [#allocation4], %s464_s29 }
 0x43e   : > { %p615_p12 = pnand %p1179_p11, %p1178_p1 }
 0x440   : > { %807 = dma.done.wait (!%p615_p12), %s465_s30, 128  }
 0x441   : > { %809 = vsyncadd (!%p615_p12), %s465_s30, 4294967168  ;;  %s474_s28 = scalar_lea.sflag [#allocation9], %s464_s29 }
 0x442   : > { %811 = dma.done.wait (!%p615_p12), %s474_s28, 128  }
 0x443   : > { %813 = vsyncadd (!%p615_p12), %s474_s28, 4294967168  ;;  %p23_p13 = scmp.ge.s32.totalorder %s886_s18, 4   ;;  %s1180_s12 = smov %s820_s13 }
 0x444   : > { %s1181_s13 = smov %s824_s14  ;;  %s1182_s14 = smov %s898_s21 }
 0x445   : > { %s1183_s15 = smov %s886_s18  ;;  %25 = sbr.rel (!%p23_p13) target bundleno = 9 (0x9), region = 103 }
 0x44c   :  { %479 = vsyncpa [#allocation3], 1 }
 0x44d   :  { %481 = vsyncpa [#allocation3 + $0x1], 1 }
 0x44e   :  { %482 = vsyncpa [#allocation6], 1 }
 0x44f   :  { %484 = vsyncpa [#allocation6 + $0x1], 1 }
 0x450   :  { %485 = vsyncpa [#allocation4], 1 }
 0x451   :  { %487 = vsyncpa [#allocation4 + $0x1], 1 }
 0x452   :  { %488 = vsyncpa [#allocation9], 1 }
 0x453   :  { %490 = vsyncpa [#allocation9 + $0x1], 1 }

</bundles_post_ra>
